<compile_context>
chip_gen: v5e
topology: v5e:2x2
jax: 0.10.0
libtpu: 0.0.40
codegen_flags: <defaults>
</compile_context>

<pallas_src>
import functools

import jax
import jax.numpy as jnp
from jax.experimental import pallas as pl
from jax.experimental.pallas import tpu as pltpu


def _resblock_kernel(x_ref, w1_ref, b1_ref, w2_ref, b2_ref, mask_ref, o_ref, *, W):
    """Fused ResBlock for one packed block of images.

    x_ref   : (1, Cp, L)     input, L = NB*H*W, channels zero-padded to Cp (mult of 8)
    w1_ref  : (Cp, 9*Cp)     conv1 weight (BN1 scale folded in), bf16
    b1_ref  : (Cp, 1)        folded BN1 bias (conv1 bias folded in), f32
    w2_ref  : (Cp, 9*Cp)     conv2 weight (BN2 scale folded in), bf16
    b2_ref  : (Cp, 1)        folded BN2 bias, f32
    mask_ref: (9*Cp, L)      {0,1} per-tap boundary mask, f32
    o_ref   : (1, Cp, L)     output (full padded channel block, unmasked store)
    """
    L = x_ref.shape[-1]
    # Lane offset of each of the 9 taps (dy, dx), same order as weight packing.
    offsets = [dy * W + dx for dy in (-1, 0, 1) for dx in (-1, 0, 1)]

    x = x_ref[0].astype(jnp.float32)          # (Cp, L)
    mask = mask_ref[...]                      # (9*Cp, L), f32 {0,1}

    def conv3x3(inp, w_ref):
        # Build the 9 shifted taps with lane rolls (XLU slot, no strided VMEM
        # slices), stack along the 8-aligned sublane axis, zero out-of-image
        # positions with ONE precomputed-mask multiply (no broadcasts), and run
        # ONE bf16 MXU matmul with K = 9*Cp, accumulating in f32.
        taps = [inp if off == 0 else pltpu.roll(inp, shift=(-off) % L, axis=1)
                for off in offsets]
        patches = jnp.concatenate(taps, axis=0) * mask        # (9*Cp, L) f32
        return jnp.dot(w_ref[...], patches.astype(jnp.bfloat16),
                       preferred_element_type=jnp.float32)

    # conv1 (+BN1 folded) -> ReLU.   (Dropout is identity in eval mode.)
    h = jnp.maximum(conv3x3(x, w1_ref) + b1_ref[...], 0.0)    # (Cp, L) f32

    # conv2 (+BN2 folded) -> + residual -> ReLU.
    y = conv3x3(h, w2_ref) + b2_ref[...] + x
    o_ref[0] = jnp.maximum(y, 0.0).astype(o_ref.dtype)        # full-block vst


def _fold_bn(gamma, beta, mean, var, conv_bias, eps=1e-5):
    scale = gamma / jnp.sqrt(var + eps)
    bias = beta + scale * (conv_bias - mean)
    return scale, bias


def _pack_weight(w_hwio, c_pad, scale):
    # (3,3,Cin,Cout) HWIO -> (Cp, 9*Cp), rows = out-ch, cols = tap*Cp + in-ch,
    # with the per-out-channel BN scale folded in.  Cast to bf16 for the MXU.
    kh, kw, cin, cout = w_hwio.shape
    wt = jnp.transpose(w_hwio, (3, 0, 1, 2))                  # (Cout,3,3,Cin)
    wt = wt * scale[:, None, None, None]
    wt = jnp.pad(wt, ((0, c_pad - cout), (0, 0), (0, 0), (0, c_pad - cin)))
    return wt.reshape(c_pad, kh * kw * c_pad).astype(jnp.bfloat16)


def _pack_bias(vec, c_pad):
    c = vec.shape[0]
    return jnp.pad(vec.astype(jnp.float32), (0, c_pad - c)).reshape(c_pad, 1)


def _make_tap_mask(H, W, NB, c_pad):
    # Per-tap {0,1} validity masks over the packed lane axis (NB images back to
    # back).  ys/xs are computed modulo HW so image boundaries stay zeroed even
    # when several images share the lane axis.
    HW = H * W
    L = NB * HW
    lane = jnp.arange(L, dtype=jnp.int32)
    ys = (lane % HW) // W
    xs = lane % W
    rows = []
    for dy in (-1, 0, 1):
        for dx in (-1, 0, 1):
            ok = ((ys + dy >= 0) & (ys + dy < H) &
                  (xs + dx >= 0) & (xs + dx < W)).astype(jnp.float32)
            rows.append(jnp.broadcast_to(ok[None, :], (c_pad, L)))
    return jnp.concatenate(rows, axis=0)                      # (9*Cp, L)


@jax.jit
def resblock_forward(x_nchw, params):
    """Pallas ResBlock forward. Input/output in PyTorch NCHW layout."""
    N, C, H, W = x_nchw.shape
    HW = H * W
    assert params["conv1_w"].shape[-1] == C, "residual add needs Cout == Cin"
    c_pad = max(8, ((C + 7) // 8) * 8)        # sublane-align the channel axis

    # Keep 2 parallel grid steps when possible (v7x has 2 TCs); pack the rest
    # of the batch onto the lane axis to amortize per-step overhead.
    G = 2 if (N >= 2 and N % 2 == 0) else 1
    NB = N // G
    L = NB * HW

    # Channels-first, channel-padded, batch packed onto the lane axis.
    x3 = x_nchw.reshape(N, C, HW)
    x3 = jnp.pad(x3, ((0, 0), (0, c_pad - C), (0, 0)))         # (N, Cp, HW)
    x3 = x3.reshape(G, NB, c_pad, HW).transpose(0, 2, 1, 3).reshape(G, c_pad, L)

    s1, b1 = _fold_bn(params["bn1_gamma"], params["bn1_beta"],
                      params["bn1_mean"], params["bn1_var"], params["conv1_b"])
    s2, b2 = _fold_bn(params["bn2_gamma"], params["bn2_beta"],
                      params["bn2_mean"], params["bn2_var"], params["conv2_b"])

    w1 = _pack_weight(params["conv1_w"], c_pad, s1)            # bf16, BN-scaled
    w2 = _pack_weight(params["conv2_w"], c_pad, s2)
    b1p = _pack_bias(b1, c_pad)
    b2p = _pack_bias(b2, c_pad)
    mask = _make_tap_mask(H, W, NB, c_pad)                     # (9*Cp, L) f32

    kernel = functools.partial(_resblock_kernel, W=W)

    flops = 2 * (2 * c_pad * (9 * c_pad) * L) * G              # two convs
    bytes_accessed = int(x3.size * 4 + G * c_pad * L * 4 +
                         w1.size * 2 + w2.size * 2 +
                         mask.size * 4 + b1p.size * 4 + b2p.size * 4)

    out = pl.pallas_call(
        kernel,
        out_shape=jax.ShapeDtypeStruct((G, c_pad, L), x_nchw.dtype),
        grid=(G,),
        in_specs=[
            pl.BlockSpec((1, c_pad, L), lambda g: (g, 0, 0)),
            pl.BlockSpec((c_pad, 9 * c_pad), lambda g: (0, 0)),
            pl.BlockSpec((c_pad, 1), lambda g: (0, 0)),
            pl.BlockSpec((c_pad, 9 * c_pad), lambda g: (0, 0)),
            pl.BlockSpec((c_pad, 1), lambda g: (0, 0)),
            pl.BlockSpec((9 * c_pad, L), lambda g: (0, 0)),
        ],
        out_specs=pl.BlockSpec((1, c_pad, L), lambda g: (g, 0, 0)),
        compiler_params=pltpu.CompilerParams(
            dimension_semantics=("parallel",)),
        cost_estimate=pl.CostEstimate(flops=flops, transcendentals=0,
                                      bytes_accessed=bytes_accessed),
    )(x3, w1, b1p, w2, b2p, mask)

    # Unpack lanes back to NCHW and drop the padded channels (cheap XLA ops).
    out = out.reshape(G, c_pad, NB, HW).transpose(0, 2, 1, 3)
    out = out.reshape(N, c_pad, H, W)
    return out[:, :C]


def _ref_forward(x_nchw, params):
    """Pure-JAX f32 reference (same inference semantics) for validation."""
    x = jnp.transpose(x_nchw, (0, 2, 3, 1))

    def conv(h, w, b):
        y = jax.lax.conv_general_dilated(
            h, w, window_strides=(1, 1), padding="SAME",
            dimension_numbers=("NHWC", "HWIO", "NHWC"))
        return y + b

    def bn(h, g, bt, m, v, eps=1e-5):
        return (h - m) / jnp.sqrt(v + eps) * g + bt

    h = jax.nn.relu(bn(conv(x, params["conv1_w"], params["conv1_b"]),
                       params["bn1_gamma"], params["bn1_beta"],
                       params["bn1_mean"], params["bn1_var"]))
    h = bn(conv(h, params["conv2_w"], params["conv2_b"]),
           params["bn2_gamma"], params["bn2_beta"],
           params["bn2_mean"], params["bn2_var"])
    h = jax.nn.relu(h + x)
    return jnp.transpose(h, (0, 3, 1, 2))


def make_params(key, in_channels, out_channels):
    ks = jax.random.split(key, 8)
    f32 = jnp.float32
    return {
        # HWIO conv weights (equivalent to torch (Cout,Cin,3,3) transposed)
        "conv1_w": 0.1 * jax.random.normal(ks[0], (3, 3, in_channels, out_channels), f32),
        "conv1_b": 0.05 * jax.random.normal(ks[1], (out_channels,), f32),
        "conv2_w": 0.1 * jax.random.normal(ks[2], (3, 3, out_channels, out_channels), f32),
        "conv2_b": 0.05 * jax.random.normal(ks[3], (out_channels,), f32),
        "bn1_gamma": 1.0 + 0.1 * jax.random.normal(ks[4], (out_channels,), f32),
        "bn1_beta": 0.1 * jax.random.normal(ks[5], (out_channels,), f32),
        "bn1_mean": 0.05 * jax.random.normal(ks[6], (out_channels,), f32),
        "bn1_var": jnp.abs(jax.random.normal(ks[7], (out_channels,), f32)) + 0.5,
        "bn2_gamma": 1.0 + 0.05 * jax.random.normal(ks[4], (out_channels,), f32),
        "bn2_beta": 0.05 * jax.random.normal(ks[5], (out_channels,), f32),
        "bn2_mean": 0.025 * jax.random.normal(ks[6], (out_channels,), f32),
        "bn2_var": jnp.abs(jax.random.normal(ks[7], (out_channels,), f32)) * 0.5 + 0.5,
    }


if __name__ == "__main__":
    key = jax.random.PRNGKey(0)
    k_x, k_p = jax.random.split(key)

    N, C, H, W = 2, 4, 16, 16          # residual add requires in_ch == out_ch
    x = jax.random.normal(k_x, (N, C, H, W), jnp.float32)
    params = make_params(k_p, C, C)

    out = jax.block_until_ready(resblock_forward(x, params))
    ref = jax.block_until_ready(_ref_forward(x, params))

    assert out.shape == (N, C, H, W)
    # Tolerance accounts for bf16 MXU operands (f32 accumulation); reference is f32.
    assert jnp.allclose(out, ref, atol=5e-2, rtol=5e-2), "mismatch vs reference"

    print("KERNEL_OK")
</pallas_src>

<mosaic_0001>
module attributes {stable_mosaic.version = 11 : i64} {
  func.func @_resblock_kernel(%arg0: i32, %arg1: memref<1x8x256xf32, #tpu.memory_space<vmem>>, %arg2: memref<8x72xbf16, #tpu.memory_space<vmem>>, %arg3: memref<8x1xf32, #tpu.memory_space<vmem>>, %arg4: memref<8x72xbf16, #tpu.memory_space<vmem>>, %arg5: memref<8x1xf32, #tpu.memory_space<vmem>>, %arg6: memref<72x256xf32, #tpu.memory_space<vmem>>, %arg7: memref<1x8x256xf32, #tpu.memory_space<vmem>>) attributes {dimension_semantics = [#tpu.dimension_semantics<parallel>], iteration_bounds = array<i64: 2>, scalar_prefetch = 0 : i64, scratch_operands = 0 : i64, tpu.core_type = #tpu.core_type<tc>, window_params = [{transform_indices = @transform_0, window_bounds = array<i64: 1, 8, 256>}, {pipeline_mode = #tpu.pipeline_mode<synchronous>, transform_indices = @transform_1, window_bounds = array<i64: 8, 72>}, {pipeline_mode = #tpu.pipeline_mode<synchronous>, transform_indices = @transform_2, window_bounds = array<i64: 8, 1>}, {pipeline_mode = #tpu.pipeline_mode<synchronous>, transform_indices = @transform_3, window_bounds = array<i64: 8, 72>}, {pipeline_mode = #tpu.pipeline_mode<synchronous>, transform_indices = @transform_4, window_bounds = array<i64: 8, 1>}, {pipeline_mode = #tpu.pipeline_mode<synchronous>, transform_indices = @transform_5, window_bounds = array<i64: 72, 256>}, {transform_indices = @transform_6, window_bounds = array<i64: 1, 8, 256>}]} {
    %c0 = arith.constant 0 : index
    %c0_0 = arith.constant 0 : index
    %c0_1 = arith.constant 0 : index
    %0 = vector.load %arg1[%c0, %c0_0, %c0_1] : memref<1x8x256xf32, #tpu.memory_space<vmem>>, vector<1x8x256xf32>
    %1 = vector.shape_cast %0 : vector<1x8x256xf32> to vector<8x256xf32>
    %c0_2 = arith.constant 0 : index
    %c0_3 = arith.constant 0 : index
    %2 = vector.load %arg6[%c0_2, %c0_3] : memref<72x256xf32, #tpu.memory_space<vmem>>, vector<72x256xf32>
    %c17_i32 = arith.constant 17 : i32
    %3 = tpu.dynamic_rotate %1 by %c17_i32 dim 1 : vector<8x256xf32>, i32 -> vector<8x256xf32>
    %c16_i32 = arith.constant 16 : i32
    %4 = tpu.dynamic_rotate %1 by %c16_i32 dim 1 : vector<8x256xf32>, i32 -> vector<8x256xf32>
    %c15_i32 = arith.constant 15 : i32
    %5 = tpu.dynamic_rotate %1 by %c15_i32 dim 1 : vector<8x256xf32>, i32 -> vector<8x256xf32>
    %c1_i32 = arith.constant 1 : i32
    %6 = tpu.dynamic_rotate %1 by %c1_i32 dim 1 : vector<8x256xf32>, i32 -> vector<8x256xf32>
    %c255_i32 = arith.constant 255 : i32
    %7 = tpu.dynamic_rotate %1 by %c255_i32 dim 1 : vector<8x256xf32>, i32 -> vector<8x256xf32>
    %c241_i32 = arith.constant 241 : i32
    %8 = tpu.dynamic_rotate %1 by %c241_i32 dim 1 : vector<8x256xf32>, i32 -> vector<8x256xf32>
    %c240_i32 = arith.constant 240 : i32
    %9 = tpu.dynamic_rotate %1 by %c240_i32 dim 1 : vector<8x256xf32>, i32 -> vector<8x256xf32>
    %c239_i32 = arith.constant 239 : i32
    %10 = tpu.dynamic_rotate %1 by %c239_i32 dim 1 : vector<8x256xf32>, i32 -> vector<8x256xf32>
    %11 = tpu.concatenate %3, %4, %5, %6, %1, %7, %8, %9, %10 in 0 : vector<8x256xf32>, vector<8x256xf32>, vector<8x256xf32>, vector<8x256xf32>, vector<8x256xf32>, vector<8x256xf32>, vector<8x256xf32>, vector<8x256xf32>, vector<8x256xf32> -> vector<72x256xf32>
    %12 = arith.mulf %11, %2 : vector<72x256xf32>
    %c0_4 = arith.constant 0 : index
    %c0_5 = arith.constant 0 : index
    %13 = vector.load %arg2[%c0_4, %c0_5] : memref<8x72xbf16, #tpu.memory_space<vmem>>, vector<8x72xbf16>
    %14 = arith.truncf %12 : vector<72x256xf32> to vector<72x256xbf16>
    %cst = arith.constant dense<0.000000e+00> : vector<8x256xf32>
    %15 = tpu.matmul %13, %14, %cst {dimension_numbers = #tpu.dot_dimension_numbers<[1], [0], [0], [1], [0, 0, 1, 1], [], []>} : vector<8x72xbf16>, vector<72x256xbf16>, vector<8x256xf32> -> vector<8x256xf32>
    %c0_6 = arith.constant 0 : index
    %c0_7 = arith.constant 0 : index
    %16 = vector.load %arg3[%c0_6, %c0_7] : memref<8x1xf32, #tpu.memory_space<vmem>>, vector<8x1xf32>
    %17 = vector.broadcast %16 : vector<8x1xf32> to vector<8x256xf32>
    %18 = arith.addf %15, %17 : vector<8x256xf32>
    %cst_8 = arith.constant 0.000000e+00 : f32
    %19 = vector.broadcast %cst_8 : f32 to vector<8x256xf32>
    %20 = arith.maximumf %18, %19 : vector<8x256xf32>
    %c17_i32_9 = arith.constant 17 : i32
    %21 = tpu.dynamic_rotate %20 by %c17_i32_9 dim 1 : vector<8x256xf32>, i32 -> vector<8x256xf32>
    %c16_i32_10 = arith.constant 16 : i32
    %22 = tpu.dynamic_rotate %20 by %c16_i32_10 dim 1 : vector<8x256xf32>, i32 -> vector<8x256xf32>
    %c15_i32_11 = arith.constant 15 : i32
    %23 = tpu.dynamic_rotate %20 by %c15_i32_11 dim 1 : vector<8x256xf32>, i32 -> vector<8x256xf32>
    %c1_i32_12 = arith.constant 1 : i32
    %24 = tpu.dynamic_rotate %20 by %c1_i32_12 dim 1 : vector<8x256xf32>, i32 -> vector<8x256xf32>
    %c255_i32_13 = arith.constant 255 : i32
    %25 = tpu.dynamic_rotate %20 by %c255_i32_13 dim 1 : vector<8x256xf32>, i32 -> vector<8x256xf32>
    %c241_i32_14 = arith.constant 241 : i32
    %26 = tpu.dynamic_rotate %20 by %c241_i32_14 dim 1 : vector<8x256xf32>, i32 -> vector<8x256xf32>
    %c240_i32_15 = arith.constant 240 : i32
    %27 = tpu.dynamic_rotate %20 by %c240_i32_15 dim 1 : vector<8x256xf32>, i32 -> vector<8x256xf32>
    %c239_i32_16 = arith.constant 239 : i32
    %28 = tpu.dynamic_rotate %20 by %c239_i32_16 dim 1 : vector<8x256xf32>, i32 -> vector<8x256xf32>
    %29 = tpu.concatenate %21, %22, %23, %24, %20, %25, %26, %27, %28 in 0 : vector<8x256xf32>, vector<8x256xf32>, vector<8x256xf32>, vector<8x256xf32>, vector<8x256xf32>, vector<8x256xf32>, vector<8x256xf32>, vector<8x256xf32>, vector<8x256xf32> -> vector<72x256xf32>
    %30 = arith.mulf %29, %2 : vector<72x256xf32>
    %c0_17 = arith.constant 0 : index
    %c0_18 = arith.constant 0 : index
    %31 = vector.load %arg4[%c0_17, %c0_18] : memref<8x72xbf16, #tpu.memory_space<vmem>>, vector<8x72xbf16>
    %32 = arith.truncf %30 : vector<72x256xf32> to vector<72x256xbf16>
    %cst_19 = arith.constant dense<0.000000e+00> : vector<8x256xf32>
    %33 = tpu.matmul %31, %32, %cst_19 {dimension_numbers = #tpu.dot_dimension_numbers<[1], [0], [0], [1], [0, 0, 1, 1], [], []>} : vector<8x72xbf16>, vector<72x256xbf16>, vector<8x256xf32> -> vector<8x256xf32>
    %c0_20 = arith.constant 0 : index
    %c0_21 = arith.constant 0 : index
    %34 = vector.load %arg5[%c0_20, %c0_21] : memref<8x1xf32, #tpu.memory_space<vmem>>, vector<8x1xf32>
    %35 = vector.broadcast %34 : vector<8x1xf32> to vector<8x256xf32>
    %36 = arith.addf %33, %35 : vector<8x256xf32>
    %37 = arith.addf %36, %1 : vector<8x256xf32>
    %cst_22 = arith.constant 0.000000e+00 : f32
    %38 = vector.broadcast %cst_22 : f32 to vector<8x256xf32>
    %39 = arith.maximumf %37, %38 : vector<8x256xf32>
    %c0_23 = arith.constant 0 : index
    %c0_24 = arith.constant 0 : index
    %c0_25 = arith.constant 0 : index
    %40 = vector.load %arg7[%c0_23, %c0_24, %c0_25] : memref<1x8x256xf32, #tpu.memory_space<vmem>>, vector<1x8x256xf32>
    %41 = vector.shape_cast %40 : vector<1x8x256xf32> to vector<8x256xf32>
    %42 = vector.shape_cast %39 : vector<8x256xf32> to vector<1x8x256xf32>
    tpu.vector_store %arg7[%c0_23, %c0_24, %c0_25], %42 {strides = array<i32>} : memref<1x8x256xf32, #tpu.memory_space<vmem>>, vector<1x8x256xf32>,
    return
  }
  func.func @transform_0(%arg0: i32) -> (i32, i32, i32) {
    %c0_i32 = arith.constant 0 : i32
    %c0_i32_0 = arith.constant 0 : i32
    %c0_i32_1 = arith.constant 0 : i32
    return %arg0, %c0_i32, %c0_i32_0 : i32, i32, i32
  }
  func.func @transform_1(%arg0: i32) -> (i32, i32) {
    %c0_i32 = arith.constant 0 : i32
    %c0_i32_0 = arith.constant 0 : i32
    %c0_i32_1 = arith.constant 0 : i32
    return %c0_i32, %c0_i32_0 : i32, i32
  }
  func.func @transform_2(%arg0: i32) -> (i32, i32) {
    %c0_i32 = arith.constant 0 : i32
    %c0_i32_0 = arith.constant 0 : i32
    %c0_i32_1 = arith.constant 0 : i32
    return %c0_i32, %c0_i32_0 : i32, i32
  }
  func.func @transform_3(%arg0: i32) -> (i32, i32) {
    %c0_i32 = arith.constant 0 : i32
    %c0_i32_0 = arith.constant 0 : i32
    %c0_i32_1 = arith.constant 0 : i32
    return %c0_i32, %c0_i32_0 : i32, i32
  }
  func.func @transform_4(%arg0: i32) -> (i32, i32) {
    %c0_i32 = arith.constant 0 : i32
    %c0_i32_0 = arith.constant 0 : i32
    %c0_i32_1 = arith.constant 0 : i32
    return %c0_i32, %c0_i32_0 : i32, i32
  }
  func.func @transform_5(%arg0: i32) -> (i32, i32) {
    %c0_i32 = arith.constant 0 : i32
    %c0_i32_0 = arith.constant 0 : i32
    %c0_i32_1 = arith.constant 0 : i32
    return %c0_i32, %c0_i32_0 : i32, i32
  }
  func.func @transform_6(%arg0: i32) -> (i32, i32, i32) {
    %c0_i32 = arith.constant 0 : i32
    %c0_i32_0 = arith.constant 0 : i32
    %c0_i32_1 = arith.constant 0 : i32
    return %arg0, %c0_i32, %c0_i32_0 : i32, i32, i32
  }
}

</mosaic_0001>

<bundles_post_ra>
// kernel: resblock_forward.1
= control target key start
LH: loop header
LB: loop body
LE: loop exit
PB: predicated region body
PF: predicated region fallthrough
CT: control target
= control target key end

     0   :  { %s672_s21 = smov 0   ;;  %s972_s0 = inlined_call_operand.vmem [shape: f32[2,8,256], index: 0, kind: input, shape index: {}]   ;;  %s973_s1 = inlined_call_operand.vmem [shape: bf16[8,72], index: 1, kind: input, shape index: {}]   ;;  %s974_s2 = inlined_call_operand.vmem [shape: f32[8,1], index: 2, kind: input, shape index: {}]   ;;  %s975_s3 = inlined_call_operand.vmem [shape: bf16[8,72], index: 3, kind: input, shape index: {}]   ;;  %s976_s4 = inlined_call_operand.vmem [shape: f32[8,1], index: 4, kind: input, shape index: {}]   ;;  %s977_s5 = inlined_call_operand.vmem [shape: f32[72,256], index: 5, kind: input, shape index: {}]   ;;  %s978_s6 = inlined_call_operand.vmem [shape: f32[2,8,256], index: 6, kind: output, shape index: {}]  }
   0x1 LB: > { %s584_s22 = sadd.s32 4294967295, %s626_s21   ;;  %p588_p0 = scmp.ge.s32.totalorder %s626_s21, 1  ;;  %s626_s21 = sphi %s672_s21, %s16_s21  }
   0x2   : > { %p212_p1 = scmp.lt.s32.totalorder %s626_s21, 3 }
   0x4   : > { %p213_p2 = pnand %p588_p0, %p212_p1 }
   0x5   : > { %p242_p3 = scmp.lt.s32.totalorder (!%p213_p2), %s584_s22, 1  ;;  %s628_s27 = smov (!%p213_p2), 113  }
   0x6   : > { %216 = sbr.rel (%p213_p2) target bundleno = 603 (0x25b), region = 44  ;;  %s629_s28 = smov (!%p213_p2), 111  }
   0x7   : > { %s630_s29 = smov (!%p213_p2), 112   ;;  %s631_s30 = smov (!%p213_p2), 127  }
   0x8   : > { %s632_s7 = smov (!%p213_p2), 15   ;;  %s633_s8 = smov (!%p213_p2), 1  }
   0x9   : > { %s634_s9 = smov (!%p213_p2), 17   ;;  %s635_s10 = smov (!%p213_p2), 16  }
   0xb   : > { %s980_s22 = smov (!%p242_p3, %s584_s22), 1  ;;  %v277_v3 = vlaneseq  ;;  %v732_v8 = vld [vmem:[%s977_s5 + $0x80] sm:$0xff]  ;;  %v737_v9 = vld [vmem:[%s977_s5 + $0x88] sm:$0xff]  ;;  %v742_v12 = vld [vmem:[%s977_s5 + $0x70] sm:$0xff]  ;;  %vm370_vm3 = vcmask 1043456   ;;  %v636_v48 = vmov 0  }
   0xc   : > { %s599_s23 = sshll.u32 %s980_s22, 4  ;;  %v749_v14 = vld [vmem:[%s977_s5 + $0x60] sm:$0xff]  ;;  %v760_v18 = vld [vmem:[%s977_s5 + $0x78] sm:$0xff]  ;;  %v767_v20 = vld [vmem:[%s977_s5 + $0x68] sm:$0xff]  ;;  %618 = vset.pattern.permute.xlu1 %v636_v48  ;;  %619 = vset.pattern.permute.xlu0 %v636_v48  ;;  %vm366_vm9 = vcmask 588800  }
   0xd   : > { %s246_s26 = scalar_lea.vmem %s972_s0, %s599_s23  ;;  %v724_v6 = vand.u32 127, %v277_v3  ;;  %v780_v31 = vld [vmem:[%s977_s5 + $0x40] sm:$0xff]  ;;  %v785_v32 = vld [vmem:[%s977_s5 + $0x48] sm:$0xff]  ;;  %v793_v35 = vld [vmem:[%s977_s5 + $0x50] sm:$0xff] }
   0xe   : > { %v688_v0 = vld [vmem:[%s246_s26] sm:$0xff]  ;;  %v696_v1 = vld [vmem:[%s246_s26 + $0x8] sm:$0xff]  ;;  %v798_v36 = vld [vmem:[%s977_s5 + $0x58] sm:$0xff] }
   0xf   : > { %310 = vrot.lane.b32.xlu1 %v688_v0, %s628_s27  ;;  %324 = vrot.lane.b32.xlu0 %v688_v0, %s629_s28  ;;  %vm321_vm0 = vcmp.lt.s32.totalorder %v724_v6, 112  ;;  %vm314_vm1 = vcmp.lt.s32.totalorder %v724_v6, 113  ;;  %vm328_vm2 = vcmp.lt.s32.totalorder %v724_v6, 111  ;;  %vm307_vm4 = vcmp.lt.s32.totalorder %v724_v6, 127  ;;  %v360_v45 = vld [vmem:[%s974_s2] sm:$0xff]  ;;  %v816_v52 = vld [vmem:[%s977_s5 + $0x30] sm:$0xff] }
  0x10   : > { %317 = vrot.lane.b32.xlu2 %v688_v0, %s630_s29  ;;  %v339_v40 = vmul.f32 %v780_v31, %v688_v0  ;;  %v340_v41 = vmul.f32 %v785_v32, %v696_v1  ;;  %vm300_vm5 = vcmp.lt.s32.totalorder %v724_v6, 1  ;;  %vm293_vm6 = vcmp.lt.s32.totalorder %v724_v6, 15  ;;  %v823_v53 = vld [vmem:[%s977_s5 + $0x38] sm:$0xff]  ;;  %v828_v54 = vld [vmem:[%s977_s5 + $0x20] sm:$0xff]  ;;  %v833_v55 = vld [vmem:[%s977_s5 + $0x28] sm:$0xff] }
  0x11   : > { %vm279_vm7 = vcmp.lt.s32.totalorder %v724_v6, 17  ;;  %vm286_vm8 = vcmp.lt.s32.totalorder %v724_v6, 16 }
  0x17   : > { %312 = vrot.lane.b32.xlu1 %v696_v1, %s628_s27  ;;  %326 = vrot.lane.b32.xlu0 %v696_v1, %s629_s28 }
  0x18   : > { %319 = vrot.lane.b32.xlu2 %v696_v1, %s630_s29 }
  0x1f   : > { %305 = vrot.lane.b32.xlu1 %v696_v1, %s631_s30  ;;  %303 = vrot.lane.b32.xlu0 %v688_v0, %s631_s30 }
  0x20   : > { %289 = vrot.lane.b32.xlu2 %v688_v0, %s632_s7 }
  0x27   : > { %296 = vrot.lane.b32.xlu1 %v688_v0, %s633_s8  ;;  %291 = vrot.lane.b32.xlu0 %v696_v1, %s632_s7 }
  0x28   : > { %298 = vrot.lane.b32.xlu2 %v696_v1, %s633_s8 }
  0x2f   : > { %275 = vrot.lane.b32.xlu1 %v696_v1, %s634_s9  ;;  %273 = vrot.lane.b32.xlu0 %v688_v0, %s634_s9 }
  0x30   : > { %282 = vrot.lane.b32.xlu2 %v688_v0, %s635_s10 }
  0x37   : > { %284 = vrot.lane.b32.xlu0 %v696_v1, %s635_s10  ;;  %363 = vperm.xlu1 %618, %v360_v45  }
  0x6a   : > { %v318_v2 = vpop.permute.xlu2 %317 }
  0x72   : > { %v320_v7 = vpop.permute.xlu2 %319 }
  0x73   : > { %v322_v13 = vsel %vm321_vm0, %v318_v2, %v320_v7  ;;  %v323_v19 = vsel %vm321_vm0, %v320_v7, %v318_v2 }
  0x74   : > { %v345_v24 = vmul.f32 %v322_v13, %v742_v12  ;;  %v346_v29 = vmul.f32 %v323_v19, %v760_v18  ;;  %v866_v19 = vld [vmem:[%s977_s5 + $0x10] sm:$0xff] }
  0x7a   : > { %v290_v28 = vpop.permute.xlu2 %289 }
  0x81   : > { %v311_v4 = vpop.permute.xlu1 %310  ;;  %v325_v5 = vpop.permute.xlu0 %324 }
  0x82   : > { %v299_v51 = vpop.permute.xlu2 %298 }
  0x89   : > { %v313_v10 = vpop.permute.xlu1 %312  ;;  %v327_v11 = vpop.permute.xlu0 %326 }
  0x8a   : > { %v315_v15 = vsel %vm314_vm1, %v311_v4, %v313_v10  ;;  %v329_v16 = vsel %vm328_vm2, %v325_v5, %v327_v11  ;;  %v330_v17 = vsel %vm328_vm2, %v327_v11, %v325_v5  ;;  %v316_v21 = vsel %vm314_vm1, %v313_v10, %v311_v4  ;;  %v851_v11 = vld [vmem:[%s977_s5] sm:$0xff]  ;;  %v283_v13 = vpop.permute.xlu2 %282 }
  0x8b   : > { %v347_v22 = vmul.f32 %v329_v16, %v732_v8  ;;  %v348_v23 = vmul.f32 %v330_v17, %v737_v9  ;;  %v343_v25 = vmul.f32 %v315_v15, %v749_v14  ;;  %v344_v30 = vmul.f32 %v316_v21, %v767_v20  ;;  %v857_v15 = vld [vmem:[%s977_s5 + $0x8] sm:$0xff]  ;;  %v871_v21 = vld [vmem:[%s977_s5 + $0x18] sm:$0xff] }
  0x8d   : > { %v358_v26 = vpack.c.bf16 %v347_v22, %v347_v22  ;;  %v359_v27 = vpack.c.bf16 %v348_v23, %v348_v23  ;;  %v356_v39 = vpack.c.bf16 %v345_v24, %v343_v25  ;;  %v357_v44 = vpack.c.bf16 %v346_v29, %v344_v30 }
  0x8f   : > { %v372_v33 = vsel %vm370_vm3, %v358_v26, 0  ;;  %v375_v34 = vsel %vm370_vm3, %v359_v27, 0 }
  0x90   : > { %380 = vmatpush.bf16.msra.mxu0 %v372_v33  ;;  %393 = vmatpush.bf16.msra.mxu1 %v375_v34  ;;  %v349_v33 = vld [vmem:[%s973_s1] sm:$0xf] }
  0x91   : > { %v306_v37 = vpop.permute.xlu1 %305  ;;  %v304_v38 = vpop.permute.xlu0 %303 }
  0x92   : > { %v308_v42 = vsel %vm307_vm4, %v304_v38, %v306_v37  ;;  %v309_v43 = vsel %vm307_vm4, %v306_v37, %v304_v38 }
  0x93   : > { %v341_v46 = vmul.f32 %v308_v42, %v793_v35  ;;  %v342_v47 = vmul.f32 %v309_v43, %v798_v36 }
  0x94   : > { %381 = vmatpush.bf16.msra.mxu0 %v356_v39  ;;  %394 = vmatpush.bf16.msra.mxu1 %v357_v44 }
  0x95   : > { %v354_v49 = vpack.c.bf16 %v341_v46, %v339_v40  ;;  %v355_v50 = vpack.c.bf16 %v342_v47, %v340_v41 }
  0x98   : > { %382 = vmatpush.bf16.msra.mxu0 %v354_v49  ;;  %395 = vmatpush.bf16.msra.mxu1 %v355_v50 }
  0x99   : > { %v297_v56 = vpop.permute.xlu1 %296  ;;  %v292_v57 = vpop.permute.xlu0 %291 }
  0x9a   : > { %v301_v58 = vsel %vm300_vm5, %v297_v56, %v299_v51  ;;  %v302_v59 = vsel %vm300_vm5, %v299_v51, %v297_v56  ;;  %v294_v60 = vsel %vm293_vm6, %v290_v28, %v292_v57  ;;  %v295_v61 = vsel %vm293_vm6, %v292_v57, %v290_v28 }
  0x9b   : > { %v337_v62 = vmul.f32 %v302_v59, %v816_v52  ;;  %v338_v63 = vmul.f32 %v301_v58, %v823_v53  ;;  %v335_v2 = vmul.f32 %v295_v61, %v828_v54  ;;  %v336_v3 = vmul.f32 %v294_v60, %v833_v55 }
  0x9d   : > { %v352_v4 = vpack.c.bf16 %v337_v62, %v335_v2  ;;  %v353_v5 = vpack.c.bf16 %v338_v63, %v336_v3 }
  0x9f   : > { %383 = vmatpush.bf16.msra.mxu0 %v352_v4  ;;  %396 = vmatpush.bf16.msra.mxu1 %v353_v5  ;;  %v482_v4 = vld [vmem:[%s976_s4] sm:$0xff] }
  0xa1   : > { %v274_v7 = vpop.permute.xlu0 %273  ;;  %v276_v10 = vpop.permute.xlu1 %275 }
  0xa2   : > { %v280_v16 = vsel %vm279_vm7, %v274_v7, %v276_v10  ;;  %v281_v17 = vsel %vm279_vm7, %v276_v10, %v274_v7 }
  0xa3   : > { %v331_v25 = vmul.f32 %v281_v17, %v851_v11  ;;  %v332_v26 = vmul.f32 %v280_v16, %v857_v15 }
  0xa9   : > { %v285_v22 = vpop.permute.xlu0 %284  ;;  %v364_v34 = vpop.permute.xlu1 %363 }
  0xaa   : > { %v287_v23 = vsel %vm286_vm8, %v283_v13, %v285_v22  ;;  %v288_v24 = vsel %vm286_vm8, %v285_v22, %v283_v13 }
  0xab   : > { %v333_v27 = vmul.f32 %v288_v24, %v866_v19  ;;  %v334_v28 = vmul.f32 %v287_v23, %v871_v21 }
  0xad   : > { %v350_v29 = vpack.c.bf16 %v333_v27, %v331_v25  ;;  %v351_v30 = vpack.c.bf16 %v334_v28, %v332_v26 }
  0xaf   : > { %384 = vmatpush.bf16.msra.mxu0 %v350_v29  ;;  %397 = vmatpush.bf16.msra.mxu1 %v351_v30 }
  0xb2   : > { %593 = vmatmul.msk.bf16.vlgmr.msra.gmra.mxu0 %vm366_vm9, %v349_v33  ;;  %594 = vmatmul.msk.bf16.vlgmr.msra.gmra.mxu1 %vm366_vm9, %v349_v33 }
 0x12f   : > { %v386_v37 = vpop.f32.mrf.mxu0  ;;  %v399_v38 = vpop.f32.mrf.mxu1 }
 0x130   : > { %v387_v39 = vadd.f32 %v386_v37, %v364_v34  ;;  %v400_v40 = vadd.f32 %v399_v38, %v364_v34 }
 0x132   : > { %v403_v41 = vmax.f32 %v387_v39, 0.0  ;;  %v404_v42 = vmax.f32 %v400_v40, 0.0 }
 0x134   : > { %449 = vrot.lane.b32.xlu0 %v404_v42, %s629_s28  ;;  %435 = vrot.lane.b32.xlu1 %v403_v41, %s628_s27  ;;  %v462_v26 = vmul.f32 %v404_v42, %v785_v32 }
 0x135   : > { %447 = vrot.lane.b32.xlu2 %v403_v41, %s629_s28 }
 0x137   : > { %v388_v43 = vpop.f32.mrf.mxu0  ;;  %v401_v44 = vpop.f32.mrf.mxu1 }
 0x13c   : > { %441 = vrot.lane.b32.xlu0 %v403_v41, %s630_s29  ;;  %443 = vrot.lane.b32.xlu1 %v404_v42, %s630_s29 }
 0x13d   : > { %437 = vrot.lane.b32.xlu2 %v404_v42, %s628_s27 }
 0x144   : > { %431 = vrot.lane.b32.xlu0 %v404_v42, %s631_s30  ;;  %417 = vrot.lane.b32.xlu1 %v403_v41, %s632_s7 }
 0x145   : > { %429 = vrot.lane.b32.xlu2 %v403_v41, %s631_s30 }
 0x14c   : > { %423 = vrot.lane.b32.xlu0 %v403_v41, %s633_s8  ;;  %425 = vrot.lane.b32.xlu1 %v404_v42, %s633_s8 }
 0x14d   : > { %419 = vrot.lane.b32.xlu2 %v404_v42, %s632_s7 }
 0x154   : > { %407 = vrot.lane.b32.xlu0 %v404_v42, %s634_s9  ;;  %411 = vrot.lane.b32.xlu1 %v403_v41, %s635_s10 }
 0x155   : > { %405 = vrot.lane.b32.xlu2 %v403_v41, %s634_s9  ;;  %s251_s9 = scalar_lea.vmem %s978_s6, %s599_s23 }
 0x15c   : > { %485 = vperm.xlu0 %619, %v482_v4  }
 0x15d   : > { %413 = vrot.lane.b32.xlu2 %v404_v42, %s635_s10 }
 0x18f   : > { %v448_v45 = vpop.permute.xlu2 %447 }
 0x197   : > { %v438_v46 = vpop.permute.xlu2 %437 }
 0x19f   : > { %v430_v49 = vpop.permute.xlu2 %429 }
 0x1a6   : > { %v450_v47 = vpop.permute.xlu0 %449  ;;  %v436_v48 = vpop.permute.xlu1 %435 }
 0x1a7   : > { %v451_v50 = vsel %vm328_vm2, %v448_v45, %v450_v47  ;;  %v452_v51 = vsel %vm328_vm2, %v450_v47, %v448_v45  ;;  %v439_v62 = vsel %vm314_vm1, %v436_v48, %v438_v46  ;;  %v440_v63 = vsel %vm314_vm1, %v438_v46, %v436_v48  ;;  %v420_v16 = vpop.permute.xlu2 %419 }
 0x1a8   : > { %v469_v56 = vmul.f32 %v451_v50, %v732_v8  ;;  %v470_v57 = vmul.f32 %v452_v51, %v737_v9  ;;  %v465_v5 = vmul.f32 %v439_v62, %v749_v14  ;;  %v466_v7 = vmul.f32 %v440_v63, %v767_v20  ;;  %v471_v51 = vld [vmem:[%s975_s3] sm:$0xf] }
 0x1aa   : > { %v480_v58 = vpack.c.bf16 %v469_v56, %v469_v56  ;;  %v481_v59 = vpack.c.bf16 %v470_v57, %v470_v57 }
 0x1ac   : > { %v492_v60 = vsel %vm370_vm3, %v480_v58, 0  ;;  %v495_v61 = vsel %vm370_vm3, %v481_v59, 0 }
 0x1ad   : > { %500 = vmatpush.bf16.msra.mxu2 %v492_v60  ;;  %513 = vmatpush.bf16.msra.mxu3 %v495_v61 }
 0x1ae   : > { %v442_v2 = vpop.permute.xlu0 %441  ;;  %v444_v3 = vpop.permute.xlu1 %443 }
 0x1af   : > { %v445_v8 = vsel %vm321_vm0, %v442_v2, %v444_v3  ;;  %v446_v9 = vsel %vm321_vm0, %v444_v3, %v442_v2  ;;  %v406_v29 = vpop.permute.xlu2 %405 }
 0x1b0   : > { %v467_v10 = vmul.f32 %v445_v8, %v742_v12  ;;  %v468_v13 = vmul.f32 %v446_v9, %v760_v18  ;;  %v461_v18 = vmul.f32 %v403_v41, %v780_v31 }
 0x1b2   : > { %v478_v17 = vpack.c.bf16 %v467_v10, %v465_v5  ;;  %v479_v22 = vpack.c.bf16 %v468_v13, %v466_v7 }
 0x1b4   : > { %501 = vmatpush.bf16.msra.mxu2 %v478_v17  ;;  %514 = vmatpush.bf16.msra.mxu3 %v479_v22 }
 0x1b6   : > { %v432_v23 = vpop.permute.xlu0 %431  ;;  %v418_v24 = vpop.permute.xlu1 %417 }
 0x1b7   : > { %v433_v25 = vsel %vm307_vm4, %v430_v49, %v432_v23  ;;  %v434_v14 = vsel %vm307_vm4, %v432_v23, %v430_v49  ;;  %v421_v30 = vsel %vm293_vm6, %v418_v24, %v420_v16  ;;  %v422_v33 = vsel %vm293_vm6, %v420_v16, %v418_v24  ;;  %v414_v42 = vpop.permute.xlu2 %413 }
 0x1b8   : > { %v463_v20 = vmul.f32 %v433_v25, %v793_v35  ;;  %v464_v12 = vmul.f32 %v434_v14, %v798_v36  ;;  %v457_v32 = vmul.f32 %v422_v33, %v828_v54  ;;  %v458_v36 = vmul.f32 %v421_v30, %v833_v55 }
 0x1ba   : > { %v476_v27 = vpack.c.bf16 %v463_v20, %v461_v18  ;;  %v477_v28 = vpack.c.bf16 %v464_v12, %v462_v26 }
 0x1bc   : > { %502 = vmatpush.bf16.msra.mxu2 %v476_v27  ;;  %515 = vmatpush.bf16.msra.mxu3 %v477_v28 }
 0x1be   : > { %v424_v34 = vpop.permute.xlu0 %423  ;;  %v426_v37 = vpop.permute.xlu1 %425 }
 0x1bf   : > { %v427_v35 = vsel %vm300_vm5, %v424_v34, %v426_v37  ;;  %v428_v31 = vsel %vm300_vm5, %v426_v37, %v424_v34 }
 0x1c0   : > { %v459_v38 = vmul.f32 %v428_v31, %v816_v52  ;;  %v460_v39 = vmul.f32 %v427_v35, %v823_v53 }
 0x1c2   : > { %v474_v40 = vpack.c.bf16 %v459_v38, %v457_v32  ;;  %v475_v41 = vpack.c.bf16 %v460_v39, %v458_v36 }
 0x1c4   : > { %503 = vmatpush.bf16.msra.mxu2 %v474_v40  ;;  %516 = vmatpush.bf16.msra.mxu3 %v475_v41 }
 0x1c6   : > { %v408_v43 = vpop.permute.xlu0 %407  ;;  %v412_v44 = vpop.permute.xlu1 %411 }
 0x1c7   : > { %v409_v45 = vsel %vm279_vm7, %v406_v29, %v408_v43  ;;  %v410_v46 = vsel %vm279_vm7, %v408_v43, %v406_v29  ;;  %v415_v54 = vsel %vm286_vm8, %v412_v44, %v414_v42  ;;  %v416_v52 = vsel %vm286_vm8, %v414_v42, %v412_v44 }
 0x1c8   : > { %v453_v53 = vmul.f32 %v410_v46, %v851_v11  ;;  %v454_v55 = vmul.f32 %v409_v45, %v857_v15  ;;  %v455_v47 = vmul.f32 %v416_v52, %v866_v19  ;;  %v456_v48 = vmul.f32 %v415_v54, %v871_v21 }
 0x1ca   : > { %v472_v49 = vpack.c.bf16 %v455_v47, %v453_v53  ;;  %v473_v50 = vpack.c.bf16 %v456_v48, %v454_v55 }
 0x1cc   : > { %504 = vmatpush.bf16.msra.mxu2 %v472_v49  ;;  %517 = vmatpush.bf16.msra.mxu3 %v473_v50 }
 0x1ce   : > { %v486_v6 = vpop.permute.xlu0 %485 }
 0x1cf   : > { %595 = vmatmul.msk.bf16.vlgmr.msra.gmra.mxu2 %vm366_vm9, %v471_v51  ;;  %596 = vmatmul.msk.bf16.vlgmr.msra.gmra.mxu3 %vm366_vm9, %v471_v51 }
 0x252   : > { %v506_v11 = vpop.f32.mrf.mxu2  ;;  %v519_v15 = vpop.f32.mrf.mxu3 }
 0x253   : > { %v507_v56 = vadd.f32 %v506_v11, %v486_v6  ;;  %v520_v19 = vadd.f32 %v519_v15, %v486_v6 }
 0x255   : > { %v523_v57 = vadd.f32 %v507_v56, %v688_v0  ;;  %v524_v21 = vadd.f32 %v520_v19, %v696_v1 }
 0x257   : > { %v525_v58 = vmax.f32 %v523_v57, 0.0  ;;  %v526_v59 = vmax.f32 %v524_v21, 0.0 }
 0x259   : > { %527 = vst [vmem:[%s251_s9] sm:$0xff] %v525_v58 }
 0x25a   : > { %528 = vst [vmem:[%s251_s9 + $0x8] sm:$0xff] %v526_v59  ;;  %v508_v60 = vpop.f32.mrf.mxu2  ;;  %v521_v61 = vpop.f32.mrf.mxu3 }
 0x25b PF: > { %s16_s21 = sadd.s32 1, %s626_s21  }
 0x25c   : > { %p13_p4 = scmp.ge.s32.totalorder %s16_s21, 4  }
 0x25e   :  { %15 = sbr.rel (!%p13_p4) target bundleno = 1 (0x1), region = 74 }

</bundles_post_ra>
